<compile_context>
chip_gen: v7x
topology: tpu7x:2x2x1
jax: 0.10.0
libtpu: 0.0.40
codegen_flags: <defaults>
</compile_context>

<pallas_src>
import functools

import jax
import jax.numpy as jnp
from jax.experimental import pallas as pl
from jax.experimental.pallas import tpu as pltpu


def _celoss_ls_kernel(labels_ref, logits_ref, sum_ref, cnt_ref,
                      acc_ref, cntacc_ref, *,
                      smoothing, gamma, ignore_index, num_classes,
                      n_valid, tile_n, tiles_per_split, has_partial):
    c = pl.program_id(0)     # core-split axis ("parallel")
    i = pl.program_id(1)     # row-tile axis ("arbitrary" reduction)

    @pl.when(i == 0)
    def _init():
        acc_ref[...] = jnp.zeros_like(acc_ref)
        cntacc_ref[...] = jnp.zeros_like(cntacc_ref)

    logits = logits_ref[...].astype(jnp.float32)     # (tile_n, C)
    labels = labels_ref[...]                         # (tile_n, 1) int32

    # Numerically stable log_softmax; the single full-tile exp is reused for
    # pt (only a per-row log / reciprocal afterwards).
    row_max = jnp.max(logits, axis=1, keepdims=True)
    shifted = logits - row_max
    exps = jnp.exp(shifted)                              # one EUP pass
    sum_exp = jnp.sum(exps, axis=1, keepdims=True)       # (tile_n, 1)
    logs = shifted - jnp.log(sum_exp)
    pt = exps * (1.0 / sum_exp)

    one_minus_pt = 1.0 - pt
    # (1 - pt) ** gamma — specialize integer gamma to repeated multiplication
    # (chosen at trace time; gamma is a Python float).
    if float(gamma) == int(gamma) and gamma >= 0:
        g = int(gamma)
        focal = jnp.ones_like(one_minus_pt) if g == 0 else one_minus_pt
        for _ in range(max(g - 1, 0)):
            focal = focal * one_minus_pt
    else:
        focal = jnp.exp(gamma * jnp.log(jnp.maximum(one_minus_pt, 1e-38)))

    fl = focal * logs

    # Smoothed one-hot label reconstructed implicitly from the int label:
    # weight = (1-s)+s/C at the label column, s/C elsewhere.
    uniform = smoothing / num_classes
    hit = (1.0 - smoothing) + uniform
    col = jax.lax.broadcasted_iota(jnp.int32, fl.shape, 1)
    weights = jnp.where(col == labels, hit, uniform)
    per_row = jnp.sum(fl * weights, axis=1, keepdims=True)   # (tile_n, 1)

    # Row masks (compile-time branches):
    #  - partial / duplicated tiles when N isn't covered exactly
    #  - ignore_index rows (scalar compare on the int label)
    keep = None
    if has_partial:
        row = jax.lax.broadcasted_iota(jnp.int32, (tile_n, 1), 0)
        tile_idx = c * tiles_per_split + i
        keep = (tile_idx * tile_n + row) < n_valid
    if ignore_index >= 0:
        ig = labels != ignore_index
        keep = ig if keep is None else jnp.logical_and(keep, ig)

    # Select-based masking (NOT multiply-by-mask): the partial last tile may
    # contain garbage (even NaN) rows which must not reach the accumulator.
    if keep is None:
        acc_ref[...] += per_row
        cntacc_ref[...] += 1.0
    else:
        acc_ref[...] += jnp.where(keep, per_row, 0.0)
        cntacc_ref[...] += keep.astype(jnp.float32)

    @pl.when(i == pl.num_programs(1) - 1)
    def _finalize():
        sum_ref[...] = jnp.full(sum_ref.shape, jnp.sum(acc_ref[...]),
                                jnp.float32)
        cnt_ref[...] = jnp.full(cnt_ref.shape, jnp.sum(cntacc_ref[...]),
                                jnp.float32)


def _vmem_limit_bytes():
    cap = None
    try:
        cap = getattr(pltpu.get_tpu_info(), "vmem_capacity_bytes", None)
    except Exception:
        cap = None
    if not cap:
        cap = 64 * 1024 * 1024        # assume the smallest (v7x) if unknown
    # ~3/4 of physical VMEM, capped: ~96 MiB on v5e/v6e (128 MiB physical),
    # ~48 MiB on v7x (64 MiB physical).
    return min(int(cap) * 3 // 4, 96 * 1024 * 1024)


def celoss_with_ls(logits, target, *, smoothing=0.1, gamma=3.0,
                   ignore_index=-1, max_rows_per_tile=None):
    """Label-smoothed focal CE loss.

    logits: (N, C) float (f32 or bf16 — cast to f32 inside the kernel).
    target: (N, C) one-hot (module semantics; argmax'd to labels on the host)
            or (N,) integer class labels (preferred: the kernel then only
            streams logits, halving HBM traffic of this mem-bound op).
    NB: if ignore_index >= 0 and no rows are kept, the result is 0/0 = NaN,
    matching the reference module.
    """
    N, C = logits.shape
    if target.ndim == 2:
        assert target.shape == (N, C)
        labels = jnp.argmax(target, axis=1).astype(jnp.int32)
    else:
        assert target.shape == (N,)
        labels = target.astype(jnp.int32)
    labels = labels.reshape(N, 1)

    vmem_limit = _vmem_limit_bytes()
    itemsize = jnp.dtype(logits.dtype).itemsize
    quantum = max(8, 32 // itemsize)          # f32 -> 8, bf16 -> 16, int8 -> 32
    c_pad = ((C + 127) // 128) * 128          # lane padding of the class axis

    # Per-row VMEM footprint: double-buffered logits + double-buffered labels
    # (int32, lane-padded to 128) + two (tile_n, 1) f32 accumulators
    # (lane-padded) + ~5 live f32 temporaries of the elementwise chain.
    bytes_per_row = (2 * c_pad * itemsize + 2 * 128 * 4 + 2 * 128 * 4
                     + 5 * c_pad * 4)
    budget_rows = int(vmem_limit * 0.85) // bytes_per_row
    tile_n = min(budget_rows, 1024, ((N + quantum - 1) // quantum) * quantum)
    if max_rows_per_tile is not None:
        tile_n = min(tile_n, max_rows_per_tile)
    tile_n = max(quantum, (tile_n // quantum) * quantum)
    # TODO(synk): for vocab-scale C where even a (quantum, C) block busts the
    # VMEM budget, add a class-axis grid (blocks multiple of 128) with an
    # online logsumexp carried in (tile_n, 1) scratch.

    num_tiles = (N + tile_n - 1) // tile_n
    # Split the row tiles over 2 "parallel" grid slots so v7x's two
    # TensorCores each stream half the rows; a plain loop split on 1-TC chips.
    num_splits = 2 if num_tiles >= 2 else 1
    tiles_per_split = (num_tiles + num_splits - 1) // num_splits
    has_partial = num_splits * tiles_per_split * tile_n != N

    def in_block(c, i):
        # Clamp so the (possibly duplicated) last tile of an uneven split
        # stays in bounds; duplicated rows are masked out inside the kernel.
        t = jnp.minimum(c * tiles_per_split + i, num_tiles - 1)
        return (t, 0)

    logits_spec_kwargs = {}
    if budget_rows <= 64:
        # Tiny tiles forced by huge C: triple-buffer the big input stream so
        # DMA start latency stays hidden.
        logits_spec_kwargs["pipeline_mode"] = pl.Buffered(3)

    kernel = functools.partial(
        _celoss_ls_kernel,
        smoothing=float(smoothing), gamma=float(gamma),
        ignore_index=int(ignore_index), num_classes=C,
        n_valid=N, tile_n=tile_n, tiles_per_split=tiles_per_split,
        has_partial=has_partial,
    )

    sums, cnts = pl.pallas_call(
        kernel,
        out_shape=(
            jax.ShapeDtypeStruct((num_splits, 8, 128), jnp.float32),
            jax.ShapeDtypeStruct((num_splits, 8, 128), jnp.float32),
        ),
        grid_spec=pltpu.PrefetchScalarGridSpec(
            num_scalar_prefetch=0,
            grid=(num_splits, tiles_per_split),
            in_specs=[
                pl.BlockSpec((tile_n, 1), in_block),                    # labels
                pl.BlockSpec((tile_n, C), in_block, **logits_spec_kwargs),
            ],
            out_specs=[
                pl.BlockSpec((1, 8, 128), lambda c, i: (c, 0, 0)),
                pl.BlockSpec((1, 8, 128), lambda c, i: (c, 0, 0)),
            ],
            scratch_shapes=[
                pltpu.VMEM((tile_n, 1), jnp.float32),   # per-row loss partials
                pltpu.VMEM((tile_n, 1), jnp.float32),   # per-row keep counts
            ],
        ),
        compiler_params=pltpu.CompilerParams(
            dimension_semantics=("parallel", "arbitrary"),
            vmem_limit_bytes=vmem_limit,
        ),
    )(labels, logits)

    total = jnp.sum(sums[:, 0, 0])
    denom = jnp.sum(cnts[:, 0, 0])
    return -(total / denom)


def _reference(logits, target, smoothing=0.1, gamma=3.0, ignore_index=-1):
    logits = logits.astype(jnp.float32)
    C = target.shape[1]
    smooth = target * (1.0 - smoothing) + smoothing / C
    labels = jnp.argmax(target, axis=1)
    mask = labels != ignore_index
    logs = jax.nn.log_softmax(logits, axis=1)
    pt = jnp.exp(logs)
    per_row = jnp.sum((1.0 - pt) ** gamma * logs * smooth, axis=1)
    return -(jnp.sum(jnp.where(mask, per_row, 0.0))
             / jnp.sum(mask.astype(jnp.float32)))


if __name__ == "__main__":
    key = jax.random.PRNGKey(0)
    k1, k2, k3, k4, k5 = jax.random.split(key, 5)

    # Case 1: f32 logits, one-hot target, ignore_index=-1 (no masking path).
    N, C = 16, 32
    logits = jax.random.normal(k1, (N, C), dtype=jnp.float32)
    target = jax.nn.one_hot(jax.random.randint(k2, (N,), 0, C), C,
                            dtype=jnp.float32)
    loss = jax.block_until_ready(celoss_with_ls(logits, target))
    ref = jax.block_until_ready(_reference(logits, target))
    assert jnp.allclose(loss, ref, rtol=1e-4, atol=1e-5), (loss, ref)

    # Case 2: ragged N (partial last tile, no host-side pad) + active
    # ignore_index, one-hot target.
    N2 = 10
    logits2 = jax.random.normal(k3, (N2, C), dtype=jnp.float32)
    label_ids2 = jnp.array([0, 3, 5, 0, 7, 2, 9, 1, 0, 4], dtype=jnp.int32)
    target2 = jax.nn.one_hot(label_ids2, C, dtype=jnp.float32)
    loss2 = jax.block_until_ready(
        celoss_with_ls(logits2, target2, ignore_index=0))
    ref2 = jax.block_until_ready(_reference(logits2, target2, ignore_index=0))
    assert jnp.allclose(loss2, ref2, rtol=1e-4, atol=1e-5), (loss2, ref2)

    # Case 3: bf16 logits + integer labels (bandwidth-friendly path), several
    # tiles so the 2-way core split and clamped duplicate tile are exercised.
    N3 = 48
    logits3 = jax.random.normal(k4, (N3, C),
                                dtype=jnp.float32).astype(jnp.bfloat16)
    labels3 = jax.random.randint(k5, (N3,), 0, C, dtype=jnp.int32)
    target3 = jax.nn.one_hot(labels3, C, dtype=jnp.float32)
    loss3 = jax.block_until_ready(
        celoss_with_ls(logits3, labels3, max_rows_per_tile=16))
    ref3 = jax.block_until_ready(
        _reference(logits3.astype(jnp.float32), target3))
    assert jnp.allclose(loss3, ref3, rtol=2e-4, atol=1e-5), (loss3, ref3)

    print("KERNEL_OK")
</pallas_src>

<mosaic_0001>
module attributes {stable_mosaic.version = 11 : i64} {
  func.func @_celoss_ls_kernel(%arg0: i32, %arg1: i32, %arg2: memref<16x1xi32, #tpu.memory_space<vmem>>, %arg3: memref<16x32xf32, #tpu.memory_space<vmem>>, %arg4: memref<1x8x128xf32, #tpu.memory_space<vmem>>, %arg5: memref<1x8x128xf32, #tpu.memory_space<vmem>>, %arg6: memref<16x1xf32, #tpu.memory_space<vmem>>, %arg7: memref<16x1xf32, #tpu.memory_space<vmem>>) attributes {dimension_semantics = [#tpu.dimension_semantics<parallel>, #tpu.dimension_semantics<arbitrary>], iteration_bounds = array<i64: 1, 1>, scalar_prefetch = 0 : i64, scratch_operands = 2 : i64, tpu.core_type = #tpu.core_type<tc>, window_params = [{transform_indices = @transform_0, window_bounds = array<i64: 16, 1>}, {transform_indices = @transform_1, window_bounds = array<i64: 16, 32>}, {transform_indices = @transform_2, window_bounds = array<i64: 1, 8, 128>}, {transform_indices = @transform_3, window_bounds = array<i64: 1, 8, 128>}]} {
    %c0_i32 = arith.constant 0 : i32
    %0 = arith.cmpi eq, %arg1, %c0_i32 : i32
    %1 = arith.extui %0 : i1 to i32
    %c0_i32_0 = arith.constant 0 : i32
    %2 = arith.cmpi ne, %1, %c0_i32_0 : i32
    scf.if %2 {
      %cst_21 = arith.constant 0.000000e+00 : f32
      %43 = vector.broadcast %cst_21 : f32 to vector<16x1xf32>
      %c0_22 = arith.constant 0 : index
      %c0_23 = arith.constant 0 : index
      %44 = vector.load %arg6[%c0_22, %c0_23] : memref<16x1xf32, #tpu.memory_space<vmem>>, vector<16x1xf32>
      tpu.vector_store %arg6[%c0_22, %c0_23], %43 {strides = array<i32>} : memref<16x1xf32, #tpu.memory_space<vmem>>, vector<16x1xf32>,
      %cst_24 = arith.constant 0.000000e+00 : f32
      %45 = vector.broadcast %cst_24 : f32 to vector<16x1xf32>
      %c0_25 = arith.constant 0 : index
      %c0_26 = arith.constant 0 : index
      %46 = vector.load %arg7[%c0_25, %c0_26] : memref<16x1xf32, #tpu.memory_space<vmem>>, vector<16x1xf32>
      tpu.vector_store %arg7[%c0_25, %c0_26], %45 {strides = array<i32>} : memref<16x1xf32, #tpu.memory_space<vmem>>, vector<16x1xf32>,
    } else {
    }
    %c0 = arith.constant 0 : index
    %c0_1 = arith.constant 0 : index
    %3 = vector.load %arg3[%c0, %c0_1] : memref<16x32xf32, #tpu.memory_space<vmem>>, vector<16x32xf32>
    %c0_2 = arith.constant 0 : index
    %c0_3 = arith.constant 0 : index
    %4 = vector.load %arg2[%c0_2, %c0_3] : memref<16x1xi32, #tpu.memory_space<vmem>>, vector<16x1xi32>
    %cst = arith.constant dense<0xFF800000> : vector<16xf32>
    %5 = vector.multi_reduction <maximumf>, %3, %cst [1] : vector<16x32xf32> to vector<16xf32>
    %6 = vector.shape_cast %5 : vector<16xf32> to vector<16x1xf32>
    %7 = vector.broadcast %6 : vector<16x1xf32> to vector<16x32xf32>
    %8 = arith.subf %3, %7 : vector<16x32xf32>
    %9 = math.exp %8 : vector<16x32xf32>
    %cst_4 = arith.constant dense<0.000000e+00> : vector<16xf32>
    %10 = vector.multi_reduction <add>, %9, %cst_4 [1] : vector<16x32xf32> to vector<16xf32>
    %11 = vector.shape_cast %10 : vector<16xf32> to vector<16x1xf32>
    %12 = math.log %11 : vector<16x1xf32>
    %13 = vector.broadcast %12 : vector<16x1xf32> to vector<16x32xf32>
    %14 = arith.subf %8, %13 : vector<16x32xf32>
    %cst_5 = arith.constant 1.000000e+00 : f32
    %15 = vector.broadcast %cst_5 : f32 to vector<16x1xf32>
    %16 = arith.divf %15, %11 : vector<16x1xf32>
    %17 = vector.broadcast %16 : vector<16x1xf32> to vector<16x32xf32>
    %18 = arith.mulf %9, %17 : vector<16x32xf32>
    %cst_6 = arith.constant 1.000000e+00 : f32
    %19 = vector.broadcast %cst_6 : f32 to vector<16x32xf32>
    %20 = arith.subf %19, %18 : vector<16x32xf32>
    %21 = arith.mulf %20, %20 : vector<16x32xf32>
    %22 = arith.mulf %21, %20 : vector<16x32xf32>
    %23 = arith.mulf %22, %14 : vector<16x32xf32>
    %24 = tpu.iota {dimensions = array<i32: 1>} : vector<16x32xi32>
    %25 = vector.broadcast %4 : vector<16x1xi32> to vector<16x32xi32>
    %26 = arith.cmpi eq, %24, %25 : vector<16x32xi32>
    %cst_7 = arith.constant 0.903124988 : f32
    %cst_8 = arith.constant 3.125000e-03 : f32
    %27 = vector.broadcast %cst_7 : f32 to vector<16x32xf32>
    %28 = vector.broadcast %cst_8 : f32 to vector<16x32xf32>
    %29 = arith.select %26, %27, %28 : vector<16x32xi1>, vector<16x32xf32>
    %30 = arith.mulf %23, %29 : vector<16x32xf32>
    %cst_9 = arith.constant dense<0.000000e+00> : vector<16xf32>
    %31 = vector.multi_reduction <add>, %30, %cst_9 [1] : vector<16x32xf32> to vector<16xf32>
    %32 = vector.shape_cast %31 : vector<16xf32> to vector<16x1xf32>
    %c0_10 = arith.constant 0 : index
    %c0_11 = arith.constant 0 : index
    %33 = vector.load %arg6[%c0_10, %c0_11] : memref<16x1xf32, #tpu.memory_space<vmem>>, vector<16x1xf32>
    %34 = arith.addf %33, %32 : vector<16x1xf32>
    %c0_12 = arith.constant 0 : index
    %c0_13 = arith.constant 0 : index
    %35 = vector.load %arg6[%c0_12, %c0_13] : memref<16x1xf32, #tpu.memory_space<vmem>>, vector<16x1xf32>
    tpu.vector_store %arg6[%c0_12, %c0_13], %34 {strides = array<i32>} : memref<16x1xf32, #tpu.memory_space<vmem>>, vector<16x1xf32>,
    %c0_14 = arith.constant 0 : index
    %c0_15 = arith.constant 0 : index
    %36 = vector.load %arg7[%c0_14, %c0_15] : memref<16x1xf32, #tpu.memory_space<vmem>>, vector<16x1xf32>
    %cst_16 = arith.constant 1.000000e+00 : f32
    %37 = vector.broadcast %cst_16 : f32 to vector<16x1xf32>
    %38 = arith.addf %36, %37 : vector<16x1xf32>
    %c0_17 = arith.constant 0 : index
    %c0_18 = arith.constant 0 : index
    %39 = vector.load %arg7[%c0_17, %c0_18] : memref<16x1xf32, #tpu.memory_space<vmem>>, vector<16x1xf32>
    tpu.vector_store %arg7[%c0_17, %c0_18], %38 {strides = array<i32>} : memref<16x1xf32, #tpu.memory_space<vmem>>, vector<16x1xf32>,
    %c0_i32_19 = arith.constant 0 : i32
    %40 = arith.cmpi eq, %arg1, %c0_i32_19 : i32
    %41 = arith.extui %40 : i1 to i32
    %c0_i32_20 = arith.constant 0 : i32
    %42 = arith.cmpi ne, %41, %c0_i32_20 : i32
    scf.if %42 {
      %c0_21 = arith.constant 0 : index
      %c0_22 = arith.constant 0 : index
      %43 = vector.load %arg6[%c0_21, %c0_22] : memref<16x1xf32, #tpu.memory_space<vmem>>, vector<16x1xf32>
      %44 = vector.shape_cast %43 : vector<16x1xf32> to vector<1x16x1xf32>
      %cst_23 = arith.constant dense<0.000000e+00> : vector<1xf32>
      %45 = vector.multi_reduction <add>, %44, %cst_23 [1, 2] : vector<1x16x1xf32> to vector<1xf32>
      %46 = vector.shape_cast %45 : vector<1xf32> to vector<1x1x1xf32>
      %47 = vector.extract %46[0, 0, 0] : f32 from vector<1x1x1xf32>
      %48 = vector.broadcast %47 : f32 to vector<1x8x128xf32>
      %c0_24 = arith.constant 0 : index
      %c0_25 = arith.constant 0 : index
      %c0_26 = arith.constant 0 : index
      %49 = vector.load %arg4[%c0_24, %c0_25, %c0_26] : memref<1x8x128xf32, #tpu.memory_space<vmem>>, vector<1x8x128xf32>
      tpu.vector_store %arg4[%c0_24, %c0_25, %c0_26], %48 {strides = array<i32>} : memref<1x8x128xf32, #tpu.memory_space<vmem>>, vector<1x8x128xf32>,
      %c0_27 = arith.constant 0 : index
      %c0_28 = arith.constant 0 : index
      %50 = vector.load %arg7[%c0_27, %c0_28] : memref<16x1xf32, #tpu.memory_space<vmem>>, vector<16x1xf32>
      %51 = vector.shape_cast %50 : vector<16x1xf32> to vector<1x16x1xf32>
      %cst_29 = arith.constant dense<0.000000e+00> : vector<1xf32>
      %52 = vector.multi_reduction <add>, %51, %cst_29 [1, 2] : vector<1x16x1xf32> to vector<1xf32>
      %53 = vector.shape_cast %52 : vector<1xf32> to vector<1x1x1xf32>
      %54 = vector.extract %53[0, 0, 0] : f32 from vector<1x1x1xf32>
      %55 = vector.broadcast %54 : f32 to vector<1x8x128xf32>
      %c0_30 = arith.constant 0 : index
      %c0_31 = arith.constant 0 : index
      %c0_32 = arith.constant 0 : index
      %56 = vector.load %arg5[%c0_30, %c0_31, %c0_32] : memref<1x8x128xf32, #tpu.memory_space<vmem>>, vector<1x8x128xf32>
      tpu.vector_store %arg5[%c0_30, %c0_31, %c0_32], %55 {strides = array<i32>} : memref<1x8x128xf32, #tpu.memory_space<vmem>>, vector<1x8x128xf32>,
    } else {
    }
    return
  }
  func.func @transform_0(%arg0: i32, %arg1: i32) -> (i32, i32) {
    %c1_i32 = arith.constant 1 : i32
    %0 = arith.muli %arg0, %c1_i32 : i32
    %1 = arith.addi %0, %arg1 : i32
    %c0_i32 = arith.constant 0 : i32
    %2 = arith.minsi %1, %c0_i32 : i32
    %c0_i32_0 = arith.constant 0 : i32
    %c0_i32_1 = arith.constant 0 : i32
    return %2, %c0_i32_0 : i32, i32
  }
  func.func @transform_1(%arg0: i32, %arg1: i32) -> (i32, i32) {
    %c1_i32 = arith.constant 1 : i32
    %0 = arith.muli %arg0, %c1_i32 : i32
    %1 = arith.addi %0, %arg1 : i32
    %c0_i32 = arith.constant 0 : i32
    %2 = arith.minsi %1, %c0_i32 : i32
    %c0_i32_0 = arith.constant 0 : i32
    %c0_i32_1 = arith.constant 0 : i32
    return %2, %c0_i32_0 : i32, i32
  }
  func.func @transform_2(%arg0: i32, %arg1: i32) -> (i32, i32, i32) {
    %c0_i32 = arith.constant 0 : i32
    %c0_i32_0 = arith.constant 0 : i32
    %c0_i32_1 = arith.constant 0 : i32
    return %arg0, %c0_i32, %c0_i32_0 : i32, i32, i32
  }
  func.func @transform_3(%arg0: i32, %arg1: i32) -> (i32, i32, i32) {
    %c0_i32 = arith.constant 0 : i32
    %c0_i32_0 = arith.constant 0 : i32
    %c0_i32_1 = arith.constant 0 : i32
    return %arg0, %c0_i32, %c0_i32_0 : i32, i32, i32
  }
}

</mosaic_0001>

<bundles_post_ra>
// kernel: tpu_custom_call.1
= control target key start
LH: loop header
LB: loop body
LE: loop exit
PB: predicated region body
PF: predicated region fallthrough
CT: control target
= control target key end

     0   :  { %9 = vsyncpa [#allocation5], 0  ;;  %vm92_vm0 = vcmask 261120   ;;  %s389_s0 = inlined_call_operand.vmem [shape: s32[16,1], index: 0, kind: input, shape index: {}]   ;;  %s390_s1 = inlined_call_operand.vmem [shape: f32[16,32], index: 1, kind: input, shape index: {}]   ;;  %s391_s2 = inlined_call_operand.hbm [shape: f32[1,8,128], index: 2, kind: output, shape index: {0}]   ;;  %s392_s3 = inlined_call_operand.hbm [shape: f32[1,8,128], index: 3, kind: output, shape index: {1}]  }
   0x1   :  { %v88_v0 = vld [vmem:[%s390_s1] sm:$0xff]  ;;  %v89_v1 = vld [vmem:[%s390_s1 + $0x8] sm:$0xff] }
   0x2   :  { %10 = vsyncpa [#allocation7], 0  ;;  %v93_v2 = vsel %vm92_vm0, %v88_v0, -inf  ;;  %v96_v3 = vsel %vm92_vm0, %v89_v1, -inf  ;;  %v90_v4 = vld [vmem:[%s389_s0] sm:$0xff]  ;;  %v310_v5 = vmov 0   ;;  %v131_v19 = vlaneseq }
   0x3   :  { %94 = vmax.xlane.f32.xlu0 %v93_v2  ;;  %249 = vset.pattern.permute.xlu1 %v310_v5  ;;  %v91_v16 = vld [vmem:[%s389_s0 + $0x8] sm:$0xff]  ;;  %v311_v36 = vmov 0.003125   ;;  %vm83_vm3 = vcmask 7168   ;;  %v312_v48 = vmov 0.0   ;;  %s313_s0 = smov [#allocation4]  }
   0x4   :  { %248 = vset.pattern.permute.xlu0 %v310_v5  ;;  %v132_v22 = vand.u32 127, %v131_v19  ;;  %84 = vst.msk [vmem:[#allocation2] sm:$0xff] %vm83_vm3, %v312_v48  ;;  %86 = vst.msk [vmem:[#allocation3] sm:$0xff] %vm83_vm3, %v312_v48  ;;  %s205_s19 = sshll.u32 %s313_s0, 4  ;;  %s314_s21 = smov [#allocation6]   ;;  %s206_s19 = int_to_ptr.vmem [resolvable:$true] %s205_s19 }
   0x5   :  { %87 = vst.msk [vmem:[#allocation3 + $0x8] sm:$0xff] %vm83_vm3, %v312_v48  ;;  %85 = vst.msk [vmem:[#allocation2 + $0x8] sm:$0xff] %vm83_vm3, %v312_v48  ;;  %s215_s22 = sshll.u32 %s314_s21, 4  ;;  %s262_s23 = scalar_lea.vmem %s206_s19, 128  ;;  %s216_s22 = int_to_ptr.vmem [resolvable:$true] %s215_s22 }
   0x6   :  { %p263_p0 = scmp.ne.s32.totalorder %s206_s19, %s262_s23  ;;  %p267_p1 = scmp.lt.s32.totalorder %s206_s19, %s206_s19 }
   0x7   :  { %97 = vmax.xlane.f32.xlu0 %v96_v3  ;;  %p268_p2 = scmp.lt.s32.totalorder %s262_s23, %s262_s23 }
   0x9   :  { %p269_p3 = por %p268_p2, %p267_p1 }
   0xb   :  { %v158_v49 = vld [vmem:[#allocation3] sm:$0xff]  ;;  %v151_v53 = vld [vmem:[#allocation2] sm:$0xff]  ;;  %p270_p4 = pnand %p269_p3, %p263_p0 }
   0xc   :  { %v159_v50 = vld [vmem:[#allocation3 + $0x8] sm:$0xff]  ;;  %v160_v51 = vadd.f32 1.0, %v158_v49  ;;  %v152_v56 = vld [vmem:[#allocation2 + $0x8] sm:$0xff] }
   0xd   :  { %v161_v52 = vadd.f32 1.0, %v159_v50 }
   0xe   :  { %162 = vst.msk [vmem:[#allocation3] sm:$0xff] %vm83_vm3, %v160_v51 }
   0xf   :  { %163 = vst.msk [vmem:[#allocation3 + $0x8] sm:$0xff] %vm83_vm3, %v161_v52 }
  0x15   :  { %v183_v60 = vld [vmem:[#allocation3] sm:$0xff] }
  0x16   :  { %v184_v61 = vld [vmem:[#allocation3 + $0x8] sm:$0xff] }
  0x17   :  { %v186_v2 = vsel %vm83_vm3, %v184_v61, 0.0 }
  0x1d   :  { %134 = vperm.xlu0 %248, %v90_v4  }
  0x90   :  { %v95_v6 = vpop.xlane.xlu0 %94 }
  0x91   :  { %v99_v7 = vsub.f32 %v88_v0, %v95_v6 }
  0x93   :  { %v101_v8 = vmul.f32 1.442695, %v99_v7 }
  0x94   :  { %v98_v9 = vpop.xlane.xlu0 %97 }
  0x95   :  { %250 = vpow2.f32 %v101_v8  ;;  %v100_v10 = vsub.f32 %v89_v1, %v98_v9  ;;  %v185_v1 = vsel %vm83_vm3, %v183_v60, 0.0 }
  0x96   :  { %v187_v4 = vadd.f32 %v186_v2, %v185_v1 }
  0x97   :  { %v103_v11 = vmul.f32 1.442695, %v100_v10 }
  0x99   :  { %252 = vpow2.f32 %v103_v11 }
  0x9c   :  { %v135_v24 = vpop.permute.xlu0 %134 }
  0x9d   :  { %vm139_vm1 = vcmp.eq.s32.totalorder %v132_v22, %v135_v24 }
  0x9e   :  { %v141_v37 = vsel %vm139_vm1, 0.903125, %v311_v36 }
  0x9f   :  { %v251_v12 = vpop.eup %250 }
  0xa0   :  { %v105_v13 = vsel %vm92_vm0, %v251_v12, 0.0 }
  0xa1   :  { %106 = vadd.xlane.f32.xlu1 %v105_v13 }
  0xa3   :  { %v253_v14 = vpop.eup %252 }
  0xa4   :  { %v108_v15 = vsel %vm92_vm0, %v253_v14, 0.0 }
  0xa5   :  { %109 = vadd.xlane.f32.xlu1 %v108_v15 }
  0xb6   :  { %137 = vperm.xlu1 %249, %v91_v16  }
 0x12e   :  { %v107_v17 = vpop.xlane.xlu1 %106 }
 0x12f   :  { %254 = vlog2.f32 %v107_v17 }
 0x130   :  { %256 = vrcp.f32 %v107_v17 }
 0x132   :  { %v110_v18 = vpop.xlane.xlu1 %109 }
 0x133   :  { %258 = vlog2.f32 %v110_v18 }
 0x134   :  { %260 = vrcp.f32 %v110_v18 }
 0x136   :  { %v138_v31 = vpop.permute.xlu1 %137 }
 0x137   :  { %vm140_vm2 = vcmp.eq.s32.totalorder %v132_v22, %v138_v31 }
 0x138   :  { %v142_v43 = vsel %vm140_vm2, 0.903125, %v311_v36 }
 0x139   :  { %v255_v20 = vpop.eup %254 }
 0x13a   :  { %v257_v21 = vpop.eup %256  ;;  %v112_v26 = vmul.f32 0.6931472, %v255_v20 }
 0x13b   :  { %v121_v23 = vmul.f32 %v257_v21, %v251_v12 }
 0x13c   :  { %v115_v33 = vsub.f32 %v99_v7, %v112_v26 }
 0x13d   :  { %v259_v25 = vpop.eup %258  ;;  %v123_v27 = vsub.f32 1.0, %v121_v23 }
 0x13e   :  { %v261_v28 = vpop.eup %260  ;;  %v114_v32 = vmul.f32 0.6931472, %v259_v25 }
 0x13f   :  { %v125_v29 = vmul.f32 %v123_v27, %v123_v27  ;;  %v122_v30 = vmul.f32 %v261_v28, %v253_v14 }
 0x140   :  { %v116_v41 = vsub.f32 %v100_v10, %v114_v32 }
 0x141   :  { %v127_v34 = vmul.f32 %v125_v29, %v123_v27  ;;  %v124_v35 = vsub.f32 1.0, %v122_v30 }
 0x143   :  { %v129_v38 = vmul.f32 %v127_v34, %v115_v33  ;;  %v126_v39 = vmul.f32 %v124_v35, %v124_v35 }
 0x145   :  { %v143_v40 = vmul.f32 %v141_v37, %v129_v38  ;;  %v128_v42 = vmul.f32 %v126_v39, %v124_v35 }
 0x147   :  { %v145_v44 = vsel %vm92_vm0, %v143_v40, 0.0  ;;  %v130_v45 = vmul.f32 %v128_v42, %v116_v41 }
 0x148   :  { %146 = vadd.xlane.f32.xlu1 %v145_v44 }
 0x149   :  { %v144_v46 = vmul.f32 %v142_v43, %v130_v45 }
 0x14b   :  { %v148_v47 = vsel %vm92_vm0, %v144_v46, 0.0 }
 0x14c   :  { %149 = vadd.xlane.f32.xlu0 %v148_v47 }
 0x1d5   :  { %v147_v54 = vpop.xlane.xlu1 %146 }
 0x1d6   :  { %v153_v55 = vadd.f32 %v151_v53, %v147_v54 }
 0x1d8   :  { %156 = vst.msk [vmem:[#allocation2] sm:$0xff] %vm83_vm3, %v153_v55 }
 0x1d9   :  { %v150_v57 = vpop.xlane.xlu0 %149 }
 0x1da   :  { %v154_v58 = vadd.f32 %v152_v56, %v150_v57 }
 0x1dc   :  { %157 = vst.msk [vmem:[#allocation2 + $0x8] sm:$0xff] %vm83_vm3, %v154_v58 }
 0x1df   :  { %v167_v59 = vld [vmem:[#allocation2] sm:$0xff] }
 0x1e0   :  { %v169_v63 = vsel %vm83_vm3, %v167_v59, 0.0 }
 0x1e3   :  { %v168_v62 = vld [vmem:[#allocation2 + $0x8] sm:$0xff] }
 0x1e4   :  { %v170_v0 = vsel %vm83_vm3, %v168_v62, 0.0 }
 0x1e5   :  { %v171_v3 = vadd.f32 %v170_v0, %v169_v63 }
 0x1e7   :  { %172 = vadd.xlane.f32.xlu1 %v171_v3 }
 0x1eb   :  { %188 = vadd.xlane.f32.xlu1 %v187_v4 }
 0x274   :  { %v173_v5 = vpop.xlane.xlu1 %172 }
 0x275   :  { %v174_v6 = vrot.slane %v173_v5, 4 }
 0x277   :  { %v175_v7 = vadd.f32 %v174_v6, %v173_v5 }
 0x278   :  { %v189_v8 = vpop.xlane.xlu1 %188 }
 0x279   :  { %v176_v9 = vrot.slane %v175_v7, 2  ;;  %v190_v10 = vrot.slane %v189_v8, 4 }
 0x27b   :  { %v191_v11 = vadd.f32 %v190_v10, %v189_v8  ;;  %v177_v12 = vadd.f32 %v176_v9, %v175_v7 }
 0x27d   :  { %v192_v13 = vrot.slane %v191_v11, 2  ;;  %v178_v14 = vrot.slane %v177_v12, 1 }
 0x27f   :  { %v193_v15 = vadd.f32 %v192_v13, %v191_v11  ;;  %v179_v16 = vadd.f32 %v178_v14, %v177_v12 }
 0x281   :  { %239 = vpush %v179_v16  ;;  %v194_v17 = vrot.slane %v193_v15, 1 }
 0x283   :  { %v195_v18 = vadd.f32 %v194_v17, %v193_v15 }
 0x285   :  { %241 = vpush %v195_v18 }
 0x2b2   :  { %s240_s20 = spop %239 }
 0x2b3   :  { %v181_v19 = vstv %s240_s20 }
 0x2b4   :  { %182 = vst [vmem:[#allocation4] sm:$0xff] %v181_v19 }
 0x2b5   :  { %273 = shalt.err (!%p270_p4)
}
 0x2b6   :  { %s274_s26 = scalar_lea.hbm %s391_s2, 128 }
 0x2b7   :  { %p275_p5 = scmp.ne.s32.totalorder %s391_s2, %s274_s26  ;;  %p278_p6 = scmp.lt.u32.totalorder %s274_s26, %s391_s2 }
 0x2b9   :  { %p280_p7 = pnand %p278_p6, %p275_p5 }
 0x2bb   :  { %283 = shalt.err (!%p280_p7)
}
 0x2bc   :  { %208 = dma.vmem_to_hbm [thread:$0]  %s206_s19, 128, %s391_s2, [#allocation5]  }
 0x2bd   :  { %s242_s6 = spop %241  ;;  %s284_s7 = scalar_lea.vmem %s216_s22, 128 }
 0x2be   :  { %v197_v20 = vstv %s242_s6  ;;  %p285_p8 = scmp.ne.s32.totalorder %s216_s22, %s284_s7  ;;  %p289_p9 = scmp.lt.s32.totalorder %s216_s22, %s216_s22 }
 0x2bf   :  { %198 = vst [vmem:[#allocation6] sm:$0xff] %v197_v20  ;;  %p290_p10 = scmp.lt.s32.totalorder %s284_s7, %s284_s7 }
 0x2c1   :  { %p291_p11 = por %p290_p10, %p289_p9 }
 0x2c3   :  { %p292_p12 = pnand %p291_p11, %p285_p8 }
 0x2c5   :  { %295 = shalt.err (!%p292_p12)
}
 0x2c6   :  { %s296_s10 = scalar_lea.hbm %s392_s3, 128 }
 0x2c7   :  { %p297_p13 = scmp.ne.s32.totalorder %s392_s3, %s296_s10  ;;  %p300_p0 = scmp.lt.u32.totalorder %s296_s10, %s392_s3 }
 0x2c9   :  { %p302_p1 = pnand %p300_p0, %p297_p13 }
 0x2cb   :  { %305 = shalt.err (!%p302_p1)
}
 0x2cc   :  { %218 = dma.vmem_to_hbm [thread:$0]  %s216_s22, 128, %s392_s3, [#allocation7]  }
 0x2cd   :  { %306 = dma.done.wait [#allocation5], 128  }
 0x2ce   :  { %307 = vsyncadd [#allocation5], 4294967168 }
 0x2cf   :  { %308 = dma.done.wait [#allocation7], 128  }
 0x2d0   :  { %309 = vsyncadd [#allocation7], 4294967168 }
 0x2d1   :  { %225 = vsyncpa [#allocation5], 1 }
 0x2d2   :  { %226 = vsyncpa [#allocation7], 1 }

</bundles_post_ra>
